<compile_context>
chip_gen: v7x
topology: tpu7x:2x2x1
jax: 0.10.0
libtpu: 0.0.40
codegen_flags: <defaults>
</compile_context>

<pallas_src>
import jax
import jax.numpy as jnp
from jax.experimental import pallas as pl
from jax.experimental.pallas import tpu as pltpu

_NEG_BIG = -1e30  # bias fill for padded logit columns (never wins max / exp -> 0)


def _decision_kernel(x_ref, w1_ref, b1_ref, gamma_ref, beta_ref,
                     w2_ref, b2_ref, gumbel_ref, sample_ref, logp_ref):
    # ---- Linear 1: (B, D) @ (D, D) + b1 ----
    x = x_ref[...]
    h = jnp.dot(x, w1_ref[...], preferred_element_type=jnp.float32) + b1_ref[...]

    # ---- BatchNorm1d, training-mode biased batch stats, eps=1e-5 (single pass) ----
    # TODO(synk): running_mean/running_var momentum updates (a training-time side
    # effect of nn.BatchNorm1d) are not reproduced.
    inv_b = 1.0 / h.shape[0]
    mean = jnp.sum(h, axis=0, keepdims=True) * inv_b
    mean_sq = jnp.sum(h * h, axis=0, keepdims=True) * inv_b
    var = jnp.maximum(mean_sq - mean * mean, 0.0)
    h = (h - mean) * jax.lax.rsqrt(var + 1e-5)
    h = h * gamma_ref[...] + beta_ref[...]

    # ---- ReLU ----
    h = jnp.maximum(h, 0.0)

    # ---- Linear 2: (B, D) @ (D, O_pad) + b2  (padded columns get -1e30) ----
    logits = jnp.dot(h, w2_ref[...], preferred_element_type=jnp.float32) + b2_ref[...]

    # ---- log-softmax over dim=1, computed directly (stable, no divide) ----
    m = jnp.max(logits, axis=1, keepdims=True)
    e = jnp.exp(logits - m)
    s = jnp.sum(e, axis=1, keepdims=True)
    logp_ref[...] = (logits - m) - jnp.log(s)

    # ---- Categorical sample via Gumbel-max on the raw logits ----
    # (Gumbel-max is invariant to the per-row softmax normalization shift, so
    #  this is independent of the log-softmax reductions above.)
    # TODO(synk): the PyTorch try/except re-softmax(probs+1) fallback is not
    # reproduced; only the clean sampling path is implemented.
    z = logits + gumbel_ref[...]
    zmax = jnp.max(z, axis=1, keepdims=True)
    col = jax.lax.broadcasted_iota(jnp.int32, z.shape, 1)
    cand = jnp.where(z == zmax, col, z.shape[1])          # first index achieving max
    sample = jnp.min(cand, axis=1, keepdims=True).astype(jnp.int32)
    sample_ref[...] = jnp.broadcast_to(sample, sample_ref.shape)  # lane-dense store


@jax.jit
def decision_network_forward(key, x, w1, b1, gamma, beta, w2, b2):
    B, D = x.shape
    O = w2.shape[1]
    O_pad = ((O + 127) // 128) * 128  # lane-dense output width

    # Pad the classifier to a lane-dense width: zero weight columns, -1e30 bias
    # so padded logits never win the max and contribute exp(.)=0 to the sum.
    w2_pad = jnp.pad(w2, ((0, 0), (0, O_pad - O)))
    b2_pad = jnp.pad(b2, ((0, 0), (0, O_pad - O)), constant_values=_NEG_BIG)

    # Gumbel noise drawn outside the kernel (works on TPU and in interpret mode).
    gumbel = jax.random.gumbel(key, (B, O_pad), jnp.float32)

    vmem_spec = pl.BlockSpec(memory_space=pltpu.MemorySpace.VMEM)

    sample_pad, logp_pad = pl.pallas_call(
        _decision_kernel,
        out_shape=(
            jax.ShapeDtypeStruct((B, O_pad), jnp.int32),
            jax.ShapeDtypeStruct((B, O_pad), jnp.float32),
        ),
        in_specs=[vmem_spec] * 8,         # x, w1, b1, gamma, beta, w2, b2, gumbel
        out_specs=(vmem_spec, vmem_spec),
    )(x, w1, b1, gamma, beta, w2_pad, b2_pad, gumbel)

    return sample_pad[:, 0], logp_pad[:, :O]


def make_params(key, input_size, output_size):
    k1, k2, k3, k4, k5, k6 = jax.random.split(key, 6)
    bound1 = 1.0 / jnp.sqrt(input_size)
    w1 = jax.random.uniform(k1, (input_size, input_size), jnp.float32, -bound1, bound1)
    b1 = jax.random.uniform(k2, (1, input_size), jnp.float32, -bound1, bound1)
    gamma = 1.0 + 0.1 * jax.random.normal(k3, (1, input_size), jnp.float32)
    beta = 0.1 * jax.random.normal(k4, (1, input_size), jnp.float32)
    w2 = jax.random.uniform(k5, (input_size, output_size), jnp.float32, -bound1, bound1)
    b2 = jax.random.uniform(k6, (1, output_size), jnp.float32, -bound1, bound1)
    return w1, b1, gamma, beta, w2, b2


def _reference_logp(x, w1, b1, gamma, beta, w2, b2):
    h = x @ w1 + b1
    mean = h.mean(0, keepdims=True)
    var = ((h - mean) ** 2).mean(0, keepdims=True)
    h = (h - mean) / jnp.sqrt(var + 1e-5)
    h = h * gamma + beta
    h = jnp.maximum(h, 0.0)
    logits = h @ w2 + b2
    return jax.nn.log_softmax(logits, axis=1)


if __name__ == "__main__":
    key = jax.random.PRNGKey(0)
    k_x, k_p, k_s = jax.random.split(key, 3)

    batch, input_size, output_size = 8, 32, 8
    x = jax.random.normal(k_x, (batch, input_size), jnp.float32)
    w1, b1, gamma, beta, w2, b2 = make_params(k_p, input_size, output_size)

    sample, log_probs = decision_network_forward(k_s, x, w1, b1, gamma, beta, w2, b2)
    jax.block_until_ready((sample, log_probs))

    assert sample.shape == (batch,) and sample.dtype == jnp.int32
    assert log_probs.shape == (batch, output_size)
    # log-softmax rows should exponentiate-sum to ~1
    assert bool(jnp.all(jnp.abs(jnp.sum(jnp.exp(log_probs), axis=1) - 1.0) < 1e-4))
    assert bool(jnp.all((sample >= 0) & (sample < output_size)))
    # loose sanity check against a pure-JAX reference (tolerates matmul precision)
    ref = _reference_logp(x, w1, b1, gamma, beta, w2, b2)
    assert bool(jnp.max(jnp.abs(log_probs - ref)) < 5e-2)

    print("KERNEL_OK")
</pallas_src>

<mosaic_0001>
module attributes {stable_mosaic.version = 11 : i64} {
  func.func @_decision_kernel(%arg0: memref<8x32xf32, #tpu.memory_space<vmem>>, %arg1: memref<32x32xf32, #tpu.memory_space<vmem>>, %arg2: memref<1x32xf32, #tpu.memory_space<vmem>>, %arg3: memref<1x32xf32, #tpu.memory_space<vmem>>, %arg4: memref<1x32xf32, #tpu.memory_space<vmem>>, %arg5: memref<32x128xf32, #tpu.memory_space<vmem>>, %arg6: memref<1x128xf32, #tpu.memory_space<vmem>>, %arg7: memref<8x128xf32, #tpu.memory_space<vmem>>, %arg8: memref<8x128xi32, #tpu.memory_space<vmem>>, %arg9: memref<8x128xf32, #tpu.memory_space<vmem>>) attributes {dimension_semantics = [], scalar_prefetch = 0 : i64, scratch_operands = 0 : i64, tpu.core_type = #tpu.core_type<tc>} {
    %c0 = arith.constant 0 : index
    %c0_0 = arith.constant 0 : index
    %0 = vector.load %arg0[%c0, %c0_0] : memref<8x32xf32, #tpu.memory_space<vmem>>, vector<8x32xf32>
    %c0_1 = arith.constant 0 : index
    %c0_2 = arith.constant 0 : index
    %1 = vector.load %arg1[%c0_1, %c0_2] : memref<32x32xf32, #tpu.memory_space<vmem>>, vector<32x32xf32>
    %cst = arith.constant dense<0.000000e+00> : vector<8x32xf32>
    %2 = tpu.matmul %0, %1, %cst {dimension_numbers = #tpu.dot_dimension_numbers<[1], [0], [0], [1], [0, 0, 1, 1], [], []>} : vector<8x32xf32>, vector<32x32xf32>, vector<8x32xf32> -> vector<8x32xf32>
    %c0_3 = arith.constant 0 : index
    %c0_4 = arith.constant 0 : index
    %3 = vector.load %arg2[%c0_3, %c0_4] : memref<1x32xf32, #tpu.memory_space<vmem>>, vector<1x32xf32>
    %4 = vector.broadcast %3 : vector<1x32xf32> to vector<8x32xf32>
    %5 = arith.addf %2, %4 : vector<8x32xf32>
    %cst_5 = arith.constant dense<0.000000e+00> : vector<32xf32>
    %6 = vector.multi_reduction <add>, %5, %cst_5 [0] : vector<8x32xf32> to vector<32xf32>
    %7 = vector.shape_cast %6 : vector<32xf32> to vector<1x32xf32>
    %cst_6 = arith.constant 1.250000e-01 : f32
    %8 = vector.broadcast %cst_6 : f32 to vector<1x32xf32>
    %9 = arith.mulf %7, %8 : vector<1x32xf32>
    %10 = arith.mulf %5, %5 : vector<8x32xf32>
    %cst_7 = arith.constant dense<0.000000e+00> : vector<32xf32>
    %11 = vector.multi_reduction <add>, %10, %cst_7 [0] : vector<8x32xf32> to vector<32xf32>
    %12 = vector.shape_cast %11 : vector<32xf32> to vector<1x32xf32>
    %cst_8 = arith.constant 1.250000e-01 : f32
    %13 = vector.broadcast %cst_8 : f32 to vector<1x32xf32>
    %14 = arith.mulf %12, %13 : vector<1x32xf32>
    %15 = arith.mulf %9, %9 : vector<1x32xf32>
    %16 = arith.subf %14, %15 : vector<1x32xf32>
    %cst_9 = arith.constant 0.000000e+00 : f32
    %17 = vector.broadcast %cst_9 : f32 to vector<1x32xf32>
    %18 = arith.maximumf %16, %17 : vector<1x32xf32>
    %19 = vector.broadcast %9 : vector<1x32xf32> to vector<8x32xf32>
    %20 = arith.subf %5, %19 : vector<8x32xf32>
    %cst_10 = arith.constant 9.99999974E-6 : f32
    %21 = vector.broadcast %cst_10 : f32 to vector<1x32xf32>
    %22 = arith.addf %18, %21 : vector<1x32xf32>
    %23 = math.rsqrt %22 : vector<1x32xf32>
    %24 = vector.broadcast %23 : vector<1x32xf32> to vector<8x32xf32>
    %25 = arith.mulf %20, %24 : vector<8x32xf32>
    %c0_11 = arith.constant 0 : index
    %c0_12 = arith.constant 0 : index
    %26 = vector.load %arg3[%c0_11, %c0_12] : memref<1x32xf32, #tpu.memory_space<vmem>>, vector<1x32xf32>
    %27 = vector.broadcast %26 : vector<1x32xf32> to vector<8x32xf32>
    %28 = arith.mulf %25, %27 : vector<8x32xf32>
    %c0_13 = arith.constant 0 : index
    %c0_14 = arith.constant 0 : index
    %29 = vector.load %arg4[%c0_13, %c0_14] : memref<1x32xf32, #tpu.memory_space<vmem>>, vector<1x32xf32>
    %30 = vector.broadcast %29 : vector<1x32xf32> to vector<8x32xf32>
    %31 = arith.addf %28, %30 : vector<8x32xf32>
    %cst_15 = arith.constant 0.000000e+00 : f32
    %32 = vector.broadcast %cst_15 : f32 to vector<8x32xf32>
    %33 = arith.maximumf %31, %32 : vector<8x32xf32>
    %c0_16 = arith.constant 0 : index
    %c0_17 = arith.constant 0 : index
    %34 = vector.load %arg5[%c0_16, %c0_17] : memref<32x128xf32, #tpu.memory_space<vmem>>, vector<32x128xf32>
    %cst_18 = arith.constant dense<0.000000e+00> : vector<8x128xf32>
    %35 = tpu.matmul %33, %34, %cst_18 {dimension_numbers = #tpu.dot_dimension_numbers<[1], [0], [0], [1], [0, 0, 1, 1], [], []>} : vector<8x32xf32>, vector<32x128xf32>, vector<8x128xf32> -> vector<8x128xf32>
    %c0_19 = arith.constant 0 : index
    %c0_20 = arith.constant 0 : index
    %36 = vector.load %arg6[%c0_19, %c0_20] : memref<1x128xf32, #tpu.memory_space<vmem>>, vector<1x128xf32>
    %37 = vector.broadcast %36 : vector<1x128xf32> to vector<8x128xf32>
    %38 = arith.addf %35, %37 : vector<8x128xf32>
    %cst_21 = arith.constant dense<0xFF800000> : vector<8xf32>
    %39 = vector.multi_reduction <maximumf>, %38, %cst_21 [1] : vector<8x128xf32> to vector<8xf32>
    %40 = vector.shape_cast %39 : vector<8xf32> to vector<8x1xf32>
    %41 = vector.broadcast %40 : vector<8x1xf32> to vector<8x128xf32>
    %42 = arith.subf %38, %41 : vector<8x128xf32>
    %43 = math.exp %42 : vector<8x128xf32>
    %cst_22 = arith.constant dense<0.000000e+00> : vector<8xf32>
    %44 = vector.multi_reduction <add>, %43, %cst_22 [1] : vector<8x128xf32> to vector<8xf32>
    %45 = vector.shape_cast %44 : vector<8xf32> to vector<8x1xf32>
    %46 = vector.broadcast %40 : vector<8x1xf32> to vector<8x128xf32>
    %47 = arith.subf %38, %46 : vector<8x128xf32>
    %48 = math.log %45 : vector<8x1xf32>
    %49 = vector.broadcast %48 : vector<8x1xf32> to vector<8x128xf32>
    %50 = arith.subf %47, %49 : vector<8x128xf32>
    %c0_23 = arith.constant 0 : index
    %c0_24 = arith.constant 0 : index
    %51 = vector.load %arg9[%c0_23, %c0_24] : memref<8x128xf32, #tpu.memory_space<vmem>>, vector<8x128xf32>
    tpu.vector_store %arg9[%c0_23, %c0_24], %50 {strides = array<i32>} : memref<8x128xf32, #tpu.memory_space<vmem>>, vector<8x128xf32>,
    %c0_25 = arith.constant 0 : index
    %c0_26 = arith.constant 0 : index
    %52 = vector.load %arg7[%c0_25, %c0_26] : memref<8x128xf32, #tpu.memory_space<vmem>>, vector<8x128xf32>
    %53 = arith.addf %38, %52 : vector<8x128xf32>
    %cst_27 = arith.constant dense<0xFF800000> : vector<8xf32>
    %54 = vector.multi_reduction <maximumf>, %53, %cst_27 [1] : vector<8x128xf32> to vector<8xf32>
    %55 = vector.shape_cast %54 : vector<8xf32> to vector<8x1xf32>
    %56 = tpu.iota {dimensions = array<i32: 1>} : vector<8x128xi32>
    %57 = vector.broadcast %55 : vector<8x1xf32> to vector<8x128xf32>
    %58 = arith.cmpf oeq, %53, %57 : vector<8x128xf32>
    %c128_i32 = arith.constant 128 : i32
    %59 = vector.broadcast %c128_i32 : i32 to vector<8x128xi32>
    %60 = arith.select %58, %56, %59 : vector<8x128xi1>, vector<8x128xi32>
    %cst_28 = arith.constant dense<2147483647> : vector<8xi32>
    %61 = vector.multi_reduction <minsi>, %60, %cst_28 [1] : vector<8x128xi32> to vector<8xi32>
    %62 = vector.shape_cast %61 : vector<8xi32> to vector<8x1xi32>
    %63 = vector.shape_cast %62 : vector<8x1xi32> to vector<8x1xi32>
    %64 = vector.broadcast %63 : vector<8x1xi32> to vector<8x128xi32>
    %c0_29 = arith.constant 0 : index
    %c0_30 = arith.constant 0 : index
    %65 = vector.load %arg8[%c0_29, %c0_30] : memref<8x128xi32, #tpu.memory_space<vmem>>, vector<8x128xi32>
    tpu.vector_store %arg8[%c0_29, %c0_30], %64 {strides = array<i32>} : memref<8x128xi32, #tpu.memory_space<vmem>>, vector<8x128xi32>,
    return
  }
}

</mosaic_0001>

<bundles_post_ra>
// kernel: decision_network_forward.1
= control target key start
LH: loop header
LB: loop body
LE: loop exit
PB: predicated region body
PF: predicated region fallthrough
CT: control target
= control target key end

     0   :  { %v379_v3 = vmov 0.0|0.0   ;;  %vm380_vm0 = vmmov 0   ;;  %v381_v6 = vmov 0.0   ;;  %s494_s0 = inlined_call_operand.vmem [shape: f32[8,32], index: 0, kind: input, shape index: {}]   ;;  %s495_s1 = inlined_call_operand.vmem [shape: f32[32,32], index: 1, kind: input, shape index: {}]   ;;  %s496_s2 = inlined_call_operand.vmem [shape: f32[1,32], index: 2, kind: input, shape index: {}]   ;;  %s497_s3 = inlined_call_operand.vmem [shape: f32[1,32], index: 3, kind: input, shape index: {}]   ;;  %s498_s4 = inlined_call_operand.vmem [shape: f32[1,32], index: 4, kind: input, shape index: {}]   ;;  %s499_s5 = inlined_call_operand.vmem [shape: f32[32,128], index: 5, kind: input, shape index: {}]   ;;  %s500_s6 = inlined_call_operand.vmem [shape: f32[1,128], index: 6, kind: input, shape index: {}]   ;;  %s501_s7 = inlined_call_operand.vmem [shape: f32[8,128], index: 7, kind: input, shape index: {}]   ;;  %s502_s8 = inlined_call_operand.vmem [shape: s32[8,128], index: 8, kind: output, shape index: {0}]   ;;  %s503_s9 = inlined_call_operand.hbm [shape: f32[8,128], index: 9, kind: output, shape index: {1}]  }
   0x1   :  { %v33_v0 = vld [vmem:[%s495_s1] sm:$0xff]  ;;  %v34_v1 = vld [vmem:[%s495_s1 + $0x8] sm:$0xff]  ;;  %v35_v2 = vld [vmem:[%s495_s1 + $0x10] sm:$0xff]  ;;  %333 = vmatprep.subr.bf16.mxu0 %v379_v3  ;;  %319 = vmatprep.mubr.msk.f32.mxu0 %vm380_vm0, %v381_v6 }
   0x2   :  { %v334_v4 = vpack.c.bf16 %v34_v1, %v33_v0  ;;  %v36_v5 = vld [vmem:[%s495_s1 + $0x18] sm:$0xff]  ;;  %339 = vmatprep.subr.bf16.mxu1 %v379_v3  ;;  %330 = vmatprep.mubr.msk.f32.mxu1 %vm380_vm0, %v381_v6 }
   0x3   :  { %15 = vsyncpa [#allocation3], 0  ;;  %v337_v7 = vpack.c.bf16 %v36_v5, %v35_v2  ;;  %v32_v8 = vld [vmem:[%s494_s0] sm:$0xff]  ;;  %vm44_vm1 = vcmask 261120   ;;  %v160_v10 = vld [vmem:[%s499_s5 + $0x8] sm:$0xff]  ;;  %v258_v54 = vlaneseq }
   0x4   :  { %335 = vmatpush3.bf16.msra.mxu0 %v334_v4  ;;  %v159_v9 = vld [vmem:[%s499_s5] sm:$0xff]  ;;  %v161_v12 = vld [vmem:[%s499_s5 + $0x10] sm:$0xff]  ;;  %v162_v13 = vld [vmem:[%s499_s5 + $0x18] sm:$0xff] }
   0x5   :  { %336 = vmatprep.subr.bf16.mxu0 %v379_v3  ;;  %v340_v11 = vpack.c.bf16 %v160_v10, %v159_v9  ;;  %v343_v14 = vpack.c.bf16 %v162_v13, %v161_v12  ;;  %v295_v15 = vld [vmem:[%s496_s2] ss:$0 sm:$0xff]  ;;  %v259_v55 = vand.u32 127, %v258_v54 }
   0x6   :  { %v297_v42 = vld [vmem:[%s497_s3] ss:$0 sm:$0xff]  ;;  %s382_s3 = smov [#allocation2]  }
   0x7   :  { %341 = vmatpush3.bf16.msra.mxu1 %v340_v11  ;;  %v298_v44 = vld [vmem:[%s498_s4] ss:$0 sm:$0xff]  ;;  %s285_s4 = sshll.u32 %s382_s3, 4  ;;  %s286_s4 = int_to_ptr.vmem [resolvable:$true] %s285_s4 }
   0x8   :  { %338 = vmatpush3.bf16.msra.mxu0 %v337_v7  ;;  %342 = vmatprep.subr.bf16.mxu1 %v379_v3  ;;  %v299_v48 = vld [vmem:[%s500_s6] ss:$0 sm:$0xff]  ;;  %s355_s6 = scalar_lea.vmem %s286_s4, 128  ;;  %p360_p1 = scmp.lt.s32.totalorder %s286_s4, %s286_s4 }
   0x9   :  { %v254_v50 = vld [vmem:[%s501_s7] sm:$0xff]  ;;  %p356_p0 = scmp.ne.s32.totalorder %s286_s4, %s355_s6  ;;  %p361_p2 = scmp.lt.s32.totalorder %s355_s6, %s355_s6 }
   0xb   :  { %320 = vmatmul.mubr.msk.f32.vlgmr.msra.gmra.mrb[0].mxu0 %vm44_vm1, %v32_v8  ;;  %344 = vmatpush3.bf16.msra.mxu1 %v343_v14  ;;  %p362_p3 = por %p361_p2, %p360_p1 }
   0xd   :  { %p363_p4 = pnand %p362_p3, %p356_p0 }
  0xde   :  { %v114_v16 = vpop.f32.mrb[0].mxu0 }
  0xdf   :  { %v115_v17 = vadd.f32 %v295_v15, %v114_v16  ;;  %v321_v18 = vpop.f32.mrb[1].mxu0 }
  0xe1   :  { %v118_v19 = vsel %vm44_vm1, %v115_v17, 0.0  ;;  %v126_v20 = vmul.f32 %v115_v17, %v115_v17 }
  0xe2   :  { %v119_v21 = vrot.slane %v118_v19, 4 }
  0xe3   :  { %v127_v22 = vsel %vm44_vm1, %v126_v20, 0.0 }
  0xe4   :  { %v120_v23 = vadd.f32 %v119_v21, %v118_v19  ;;  %v128_v24 = vrot.slane %v127_v22, 4 }
  0xe6   :  { %v121_v25 = vrot.slane %v120_v23, 2  ;;  %v129_v26 = vadd.f32 %v128_v24, %v127_v22 }
  0xe8   :  { %v122_v27 = vadd.f32 %v121_v25, %v120_v23  ;;  %v130_v28 = vrot.slane %v129_v26, 2 }
  0xea   :  { %v123_v29 = vrot.slane %v122_v27, 1  ;;  %v131_v30 = vadd.f32 %v130_v28, %v129_v26 }
  0xec   :  { %v124_v31 = vadd.f32 %v123_v29, %v122_v27  ;;  %v132_v32 = vrot.slane %v131_v30, 1 }
  0xee   :  { %v125_v33 = vmul.f32 0.125, %v124_v31  ;;  %v133_v34 = vadd.f32 %v132_v32, %v131_v30 }
  0xf0   :  { %v134_v35 = vmul.f32 0.125, %v133_v34  ;;  %v135_v36 = vmul.f32 %v125_v33, %v125_v33  ;;  %v138_v40 = vsub.f32 %v115_v17, %v125_v33 }
  0xf2   :  { %v136_v37 = vsub.f32 %v134_v35, %v135_v36 }
  0xf4   :  { %v137_v38 = vmax.f32 %v136_v37, 0.0 }
  0xf6   :  { %v139_v39 = vadd.f32 1e-05, %v137_v38 }
  0xf8   :  { %349 = vrsqrt.f32 %v139_v39 }
 0x102   :  { %v350_v41 = vpop.eup %349 }
 0x103   :  { %v141_v43 = vmul.f32 %v350_v41, %v138_v40 }
 0x105   :  { %v149_v45 = vmul.f32 %v297_v42, %v141_v43 }
 0x107   :  { %v157_v46 = vadd.f32 %v298_v44, %v149_v45 }
 0x109   :  { %v158_v47 = vmax.f32 %v157_v46, 0.0 }
 0x10b   :  { %331 = vmatmul.mubr.msk.f32.vlgmr.msra.gmra.mrb[0].mxu1 %vm44_vm1, %v158_v47 }
 0x1de   :  { %v239_v49 = vpop.f32.mrb[0].mxu1 }
 0x1df   :  { %v240_v51 = vadd.f32 %v299_v48, %v239_v49  ;;  %v332_v52 = vpop.f32.mrb[1].mxu1 }
 0x1e1   :  { %v255_v53 = vadd.f32 %v254_v50, %v240_v51 }
 0x1e3   :  { %256 = vmax.xlane.f32.xlu0 %v255_v53 }
 0x1e7   :  { %243 = vmax.xlane.f32.xlu0 %v240_v51 }
 0x270   :  { %v257_v56 = vpop.xlane.xlu0 %256 }
 0x271   :  { %vm260_vm2 = vcmp.eq.f32.partialorder %v255_v53, %v257_v56 }
 0x272   :  { %v261_v57 = vsel %vm260_vm2, %v259_v55, 128 }
 0x273   :  { %v263_v58 = vshra.s32 %v261_v57, 16  ;;  %v262_v0 = vand.u32 65535, %v261_v57 }
 0x274   :  { %v244_v59 = vpop.xlane.xlu0 %243 }
 0x275   :  { %v245_v60 = vsub.f32 %v240_v51, %v244_v59  ;;  %v265_v61 = vcvt.s32.f32 %v263_v58  ;;  %v264_v2 = vcvt.s32.f32 %v262_v0 }
 0x277   :  { %v246_v62 = vmul.f32 1.442695, %v245_v60  ;;  %266 = vmin.xlane.f32.xlu1 %v265_v61 }
 0x279   :  { %351 = vpow2.f32 %v246_v62 }
 0x283   :  { %v352_v63 = vpop.eup %351 }
 0x284   :  { %248 = vadd.xlane.f32.xlu1 %v352_v63 }
 0x304   :  { %v267_v1 = vpop.xlane.xlu1 %266 }
 0x305   :  { %vm268_vm3 = vcmp.eq.f32.partialorder %v265_v61, %v267_v1 }
 0x306   :  { %v269_v3 = vsel %vm268_vm3, %v264_v2, inf }
 0x307   :  { %270 = vmin.xlane.f32.xlu0 %v269_v3 }
 0x311   :  { %v249_v4 = vpop.xlane.xlu1 %248 }
 0x312   :  { %353 = vlog2.f32 %v249_v4 }
 0x31c   :  { %v354_v5 = vpop.eup %353 }
 0x31d   :  { %v251_v6 = vmul.f32 0.6931472, %v354_v5 }
 0x31f   :  { %v252_v7 = vsub.f32 %v245_v60, %v251_v6 }
 0x321   :  { %253 = vst [vmem:[#allocation2] sm:$0xff] %v252_v7 }
 0x322   :  { %366 = shalt.err (!%p363_p4)
}
 0x323   :  { %s367_s13 = scalar_lea.hbm %s503_s9, 128 }
 0x324   :  { %p368_p5 = scmp.ne.s32.totalorder %s503_s9, %s367_s13  ;;  %p371_p6 = scmp.lt.u32.totalorder %s367_s13, %s503_s9 }
 0x326   :  { %p373_p7 = pnand %p371_p6, %p368_p5 }
 0x328   :  { %376 = shalt.err (!%p373_p7)
}
 0x329   :  { %288 = dma.vmem_to_hbm [thread:$0]  %s286_s4, 128, %s503_s9, [#allocation3]   ;;  %v273_v8 = vcvt.f32.s32 %v267_v1 }
 0x32b   :  { %v274_v10 = vshll.u32 %v273_v8, 16 }
 0x394   :  { %v271_v9 = vpop.xlane.xlu0 %270 }
 0x395   :  { %v272_v11 = vcvt.f32.s32 %v271_v9 }
 0x397   :  { %v275_v12 = vadd.s32 %v274_v10, %v272_v11 }
 0x399   :  { %276 = vst [vmem:[%s502_s8] sm:$0xff] %v275_v12 }
 0x39a   :  { %377 = dma.done.wait [#allocation3], 128  }
 0x39b   :  { %378 = vsyncadd [#allocation3], 4294967168 }
 0x39c   :  { %294 = vsyncpa [#allocation3], 1 }

</bundles_post_ra>
